<compile_context>
chip_gen: v6e
topology: v6e:2x2x1
jax: 0.10.0
libtpu: 0.0.40
codegen_flags: <defaults>
</compile_context>

<pallas_src>
import functools

import jax
import jax.numpy as jnp
from jax.experimental import pallas as pl
from jax.experimental.pallas import tpu as pltpu


# ---------------------------------------------------------------------------
# Kernel: full 3-layer MLP for one lane-dense batch tile.
# ---------------------------------------------------------------------------
def qnet_kernel(x_ref, w1_ref, b1_ref, w2_ref, b2_ref, w3_ref, b3_ref, o_ref):
    # All activations are (features, TILE_B): batch on the 128-lane axis.
    x = x_ref[...]                                            # (num_inputs, TILE_B)

    # fc1 + ReLU : (hidden, num_inputs) @ (num_inputs, TILE_B) -> (hidden, TILE_B)
    h1 = jnp.dot(w1_ref[...], x, preferred_element_type=jnp.float32)
    h1 = jnp.maximum(h1 + b1_ref[...], 0.0)

    # fc2 + ReLU : (hidden, hidden) @ (hidden, TILE_B) -> (hidden, TILE_B)
    h2 = jnp.dot(w2_ref[...], h1.astype(w2_ref.dtype),
                 preferred_element_type=jnp.float32)
    h2 = jnp.maximum(h2 + b2_ref[...], 0.0)

    # fc3 (no activation) : (num_actions, hidden) @ (hidden, TILE_B) -> (num_actions, TILE_B)
    out = jnp.dot(w3_ref[...], h2.astype(w3_ref.dtype),
                  preferred_element_type=jnp.float32) + b3_ref[...]

    o_ref[...] = out.astype(o_ref.dtype)


# ---------------------------------------------------------------------------
# Wrapper helpers.
# ---------------------------------------------------------------------------
def _round_up(v, m):
    return ((v + m - 1) // m) * m


def _pick_tile_b(batch, desired):
    """Lane-aligned batch tile.

    * never wider than the 128-padded batch (small batches pad to 128, not `desired`),
    * large by default (8192) to amortize the ~0.35 us per-grid-step overhead,
    * split >= 2 ways for big batches so v7x's two TensorCores both get work.
    """
    b128 = _round_up(max(int(batch), 1), 128)
    tb = max(128, (int(desired) // 128) * 128)
    tb = min(tb, b128)
    if tb >= b128 and b128 >= 1024:          # one huge tile on a big batch:
        tb = _round_up(-(-b128 // 2), 128)   #   split in two for megacore (v7x)
    return tb


def prepare_qnet_params(params, *, use_bf16=False):
    """Cast / reshape torch-layout params into kernel-ready form ONCE.

    Call this when the weights change (per optimizer step in an RL loop), not on every
    forward — it avoids re-casting the ~66 KB weight set through HBM per call.
    use_bf16=True is the recommended production setting on v6e/v7x (bf16-native MXU,
    half the weight/x DMA); accumulation, bias add and ReLU stay f32 in the kernel.
    """
    wdt = jnp.bfloat16 if use_bf16 else jnp.float32
    hidden = params["w1"].shape[0]
    num_actions = params["w3"].shape[0]
    return {
        "w1": params["w1"].astype(wdt),
        "b1": params["b1"].astype(jnp.float32).reshape(hidden, 1),
        "w2": params["w2"].astype(wdt),
        "b2": params["b2"].astype(jnp.float32).reshape(hidden, 1),
        "w3": params["w3"].astype(wdt),
        "b3": params["b3"].astype(jnp.float32).reshape(num_actions, 1),
    }


@functools.partial(jax.jit, static_argnames=("tile_b",))
def _qnet_forward_impl(x, p, *, tile_b):
    B, num_inputs = x.shape
    hidden = p["w1"].shape[0]
    num_actions = p["w3"].shape[0]
    compute_dtype = p["w1"].dtype

    b_pad = _round_up(B, tile_b)
    grid = (b_pad // tile_b,)

    # (features, batch) layout; pad only the missing columns (no full zero buffer,
    # and a no-op when B is already a multiple of the tile).
    xT = x.T.astype(compute_dtype)
    if b_pad != B:
        xT = jnp.pad(xT, ((0, 0), (0, b_pad - B)))

    resident = lambda i: (0, 0)  # weights/biases: same block every step -> stay in VMEM

    out_padded = pl.pallas_call(
        qnet_kernel,
        out_shape=jax.ShapeDtypeStruct((num_actions, b_pad), jnp.float32),
        grid=grid,
        in_specs=[
            pl.BlockSpec((num_inputs, tile_b), lambda i: (0, i)),   # x tile (moves with batch)
            pl.BlockSpec((hidden, num_inputs), resident),           # w1
            pl.BlockSpec((hidden, 1), resident),                    # b1
            pl.BlockSpec((hidden, hidden), resident),               # w2
            pl.BlockSpec((hidden, 1), resident),                    # b2
            pl.BlockSpec((num_actions, hidden), resident),          # w3
            pl.BlockSpec((num_actions, 1), resident),               # b3
        ],
        out_specs=pl.BlockSpec((num_actions, tile_b), lambda i: (0, i)),
        compiler_params=pltpu.CompilerParams(
            dimension_semantics=("parallel",),           # megacore split on v7x
            vmem_limit_bytes=32 * 1024 * 1024,           # explicit, safe on v5e/v6e/v7x
        ),
    )(xT, p["w1"], p["b1"], p["w2"], p["b2"], p["w3"], p["b3"])

    return out_padded[:, :B].T  # back to (B, num_actions)


def qnet_forward(x, params, *, tile_b=8192, use_bf16=False):
    """Forward pass of Qnet.

    x:      (B, num_inputs) float32 (a (num_inputs,) vector also works).
    params: either raw torch-layout params (w*: (out,in), b*: (out,)) or the output of
            prepare_qnet_params() (preferred — hoists casts out of the hot path).
    Returns (B, num_actions) float32.
    """
    squeeze = x.ndim == 1
    if squeeze:
        x = x[None, :]
    if params["b1"].ndim == 1:          # raw params: prepare on the fly (cache in RL loops)
        params = prepare_qnet_params(params, use_bf16=use_bf16)
    tb = _pick_tile_b(x.shape[0], tile_b)
    out = _qnet_forward_impl(x, params, tile_b=tb)
    return out[0] if squeeze else out


# ---------------------------------------------------------------------------
# Init + pure-JAX reference.
# ---------------------------------------------------------------------------
def init_qnet_params(key, num_inputs=4, hidden_dim=128, num_actions=2):
    """torch.nn.Linear-style init: U(-1/sqrt(fan_in), 1/sqrt(fan_in)); torch layout (out, in)."""
    ks = jax.random.split(key, 6)

    def uniform(k, shape, fan_in):
        bound = 1.0 / jnp.sqrt(jnp.float32(fan_in))
        return jax.random.uniform(k, shape, jnp.float32, -bound, bound)

    return {
        "w1": uniform(ks[0], (hidden_dim, num_inputs), num_inputs),
        "b1": uniform(ks[1], (hidden_dim,), num_inputs),
        "w2": uniform(ks[2], (hidden_dim, hidden_dim), hidden_dim),
        "b2": uniform(ks[3], (hidden_dim,), hidden_dim),
        "w3": uniform(ks[4], (num_actions, hidden_dim), hidden_dim),
        "b3": uniform(ks[5], (num_actions,), hidden_dim),
    }


def qnet_reference(x, p):
    h1 = jnp.maximum(x @ p["w1"].T + p["b1"], 0.0)
    h2 = jnp.maximum(h1 @ p["w2"].T + p["b2"], 0.0)
    return h2 @ p["w3"].T + p["b3"]


if __name__ == "__main__":
    key = jax.random.PRNGKey(0)
    k_param, k_x, k_x2, k_x3 = jax.random.split(key, 4)

    B, num_inputs, hidden_dim, num_actions = 8, 4, 128, 2
    params = init_qnet_params(k_param, num_inputs, hidden_dim, num_actions)
    x = jax.random.normal(k_x, (B, num_inputs), dtype=jnp.float32)

    # Prepare params once (hoists casts/reshapes out of the per-call path).
    prepared_f32 = prepare_qnet_params(params)
    prepared_bf16 = prepare_qnet_params(params, use_bf16=True)

    # Small batch, f32 path: tile clamps to 128 columns (not 1024), exact vs reference.
    out = jax.block_until_ready(qnet_forward(x, prepared_f32))
    ref = qnet_reference(x, params)
    assert out.shape == (B, num_actions), out.shape
    assert jnp.allclose(out, ref, atol=1e-5, rtol=1e-5), "f32 mismatch vs. JAX reference"

    # bf16-compute path (f32 accumulation) — looser tolerance.
    out_bf16 = jax.block_until_ready(qnet_forward(x, prepared_bf16))
    assert jnp.allclose(out_bf16, ref, atol=5e-2, rtol=5e-2), "bf16 mismatch vs. JAX reference"

    # Non-multiple-of-128 batch with a small explicit tile: exercises padding + 3-step grid.
    B2 = 300
    x2 = jax.random.normal(k_x2, (B2, num_inputs), dtype=jnp.float32)
    out2 = jax.block_until_ready(qnet_forward(x2, prepared_f32, tile_b=128))
    ref2 = qnet_reference(x2, params)
    assert out2.shape == (B2, num_actions), out2.shape
    assert jnp.allclose(out2, ref2, atol=1e-4, rtol=1e-4), "tiled-batch mismatch vs. reference"

    # Large batch with the default tile: auto-splits into >=2 "parallel" grid steps
    # (both v7x TensorCores busy; harmless on v5e/v6e).
    B3 = 4096
    x3 = jax.random.normal(k_x3, (B3, num_inputs), dtype=jnp.float32)
    out3 = jax.block_until_ready(qnet_forward(x3, prepared_f32))
    ref3 = qnet_reference(x3, params)
    assert out3.shape == (B3, num_actions), out3.shape
    assert jnp.allclose(out3, ref3, atol=1e-4, rtol=1e-4), "large-batch mismatch vs. reference"

    print("KERNEL_OK")
</pallas_src>

<mosaic_0001>
module attributes {stable_mosaic.version = 11 : i64} {
  func.func @qnet_kernel(%arg0: i32, %arg1: memref<4x128xf32, #tpu.memory_space<vmem>>, %arg2: memref<128x4xf32, #tpu.memory_space<vmem>>, %arg3: memref<128x1xf32, #tpu.memory_space<vmem>>, %arg4: memref<128x128xf32, #tpu.memory_space<vmem>>, %arg5: memref<128x1xf32, #tpu.memory_space<vmem>>, %arg6: memref<2x128xf32, #tpu.memory_space<vmem>>, %arg7: memref<2x1xf32, #tpu.memory_space<vmem>>, %arg8: memref<2x128xf32, #tpu.memory_space<vmem>>) attributes {dimension_semantics = [#tpu.dimension_semantics<parallel>], iteration_bounds = array<i64: 1>, scalar_prefetch = 0 : i64, scratch_operands = 0 : i64, tpu.core_type = #tpu.core_type<tc>, window_params = [{transform_indices = @transform_0, window_bounds = array<i64: 4, 128>}, {pipeline_mode = #tpu.pipeline_mode<synchronous>, transform_indices = @transform_1, window_bounds = array<i64: 128, 4>}, {pipeline_mode = #tpu.pipeline_mode<synchronous>, transform_indices = @transform_2, window_bounds = array<i64: 128, 1>}, {pipeline_mode = #tpu.pipeline_mode<synchronous>, transform_indices = @transform_3, window_bounds = array<i64: 128, 128>}, {pipeline_mode = #tpu.pipeline_mode<synchronous>, transform_indices = @transform_4, window_bounds = array<i64: 128, 1>}, {pipeline_mode = #tpu.pipeline_mode<synchronous>, transform_indices = @transform_5, window_bounds = array<i64: 2, 128>}, {pipeline_mode = #tpu.pipeline_mode<synchronous>, transform_indices = @transform_6, window_bounds = array<i64: 2, 1>}, {transform_indices = @transform_7, window_bounds = array<i64: 2, 128>}]} {
    %c0 = arith.constant 0 : index
    %c0_0 = arith.constant 0 : index
    %0 = vector.load %arg1[%c0, %c0_0] : memref<4x128xf32, #tpu.memory_space<vmem>>, vector<4x128xf32>
    %c0_1 = arith.constant 0 : index
    %c0_2 = arith.constant 0 : index
    %1 = vector.load %arg2[%c0_1, %c0_2] : memref<128x4xf32, #tpu.memory_space<vmem>>, vector<128x4xf32>
    %cst = arith.constant dense<0.000000e+00> : vector<128x128xf32>
    %2 = tpu.matmul %1, %0, %cst {dimension_numbers = #tpu.dot_dimension_numbers<[1], [0], [0], [1], [0, 0, 1, 1], [], []>} : vector<128x4xf32>, vector<4x128xf32>, vector<128x128xf32> -> vector<128x128xf32>
    %c0_3 = arith.constant 0 : index
    %c0_4 = arith.constant 0 : index
    %3 = vector.load %arg3[%c0_3, %c0_4] : memref<128x1xf32, #tpu.memory_space<vmem>>, vector<128x1xf32>
    %4 = vector.broadcast %3 : vector<128x1xf32> to vector<128x128xf32>
    %5 = arith.addf %2, %4 : vector<128x128xf32>
    %cst_5 = arith.constant 0.000000e+00 : f32
    %6 = vector.broadcast %cst_5 : f32 to vector<128x128xf32>
    %7 = arith.maximumf %5, %6 : vector<128x128xf32>
    %c0_6 = arith.constant 0 : index
    %c0_7 = arith.constant 0 : index
    %8 = vector.load %arg4[%c0_6, %c0_7] : memref<128x128xf32, #tpu.memory_space<vmem>>, vector<128x128xf32>
    %cst_8 = arith.constant dense<0.000000e+00> : vector<128x128xf32>
    %9 = tpu.matmul %8, %7, %cst_8 {dimension_numbers = #tpu.dot_dimension_numbers<[1], [0], [0], [1], [0, 0, 1, 1], [], []>} : vector<128x128xf32>, vector<128x128xf32>, vector<128x128xf32> -> vector<128x128xf32>
    %c0_9 = arith.constant 0 : index
    %c0_10 = arith.constant 0 : index
    %10 = vector.load %arg5[%c0_9, %c0_10] : memref<128x1xf32, #tpu.memory_space<vmem>>, vector<128x1xf32>
    %11 = vector.broadcast %10 : vector<128x1xf32> to vector<128x128xf32>
    %12 = arith.addf %9, %11 : vector<128x128xf32>
    %cst_11 = arith.constant 0.000000e+00 : f32
    %13 = vector.broadcast %cst_11 : f32 to vector<128x128xf32>
    %14 = arith.maximumf %12, %13 : vector<128x128xf32>
    %c0_12 = arith.constant 0 : index
    %c0_13 = arith.constant 0 : index
    %15 = vector.load %arg6[%c0_12, %c0_13] : memref<2x128xf32, #tpu.memory_space<vmem>>, vector<2x128xf32>
    %cst_14 = arith.constant dense<0.000000e+00> : vector<2x128xf32>
    %16 = tpu.matmul %15, %14, %cst_14 {dimension_numbers = #tpu.dot_dimension_numbers<[1], [0], [0], [1], [0, 0, 1, 1], [], []>} : vector<2x128xf32>, vector<128x128xf32>, vector<2x128xf32> -> vector<2x128xf32>
    %c0_15 = arith.constant 0 : index
    %c0_16 = arith.constant 0 : index
    %17 = vector.load %arg7[%c0_15, %c0_16] : memref<2x1xf32, #tpu.memory_space<vmem>>, vector<2x1xf32>
    %18 = vector.broadcast %17 : vector<2x1xf32> to vector<2x128xf32>
    %19 = arith.addf %16, %18 : vector<2x128xf32>
    %c0_17 = arith.constant 0 : index
    %c0_18 = arith.constant 0 : index
    %20 = vector.load %arg8[%c0_17, %c0_18] : memref<2x128xf32, #tpu.memory_space<vmem>>, vector<2x128xf32>
    tpu.vector_store %arg8[%c0_17, %c0_18], %19 {strides = array<i32>} : memref<2x128xf32, #tpu.memory_space<vmem>>, vector<2x128xf32>,
    return
  }
  func.func @transform_0(%arg0: i32) -> (i32, i32) {
    %c0_i32 = arith.constant 0 : i32
    %c0_i32_0 = arith.constant 0 : i32
    return %c0_i32, %arg0 : i32, i32
  }
  func.func @transform_1(%arg0: i32) -> (i32, i32) {
    %c0_i32 = arith.constant 0 : i32
    %c0_i32_0 = arith.constant 0 : i32
    %c0_i32_1 = arith.constant 0 : i32
    return %c0_i32, %c0_i32_0 : i32, i32
  }
  func.func @transform_2(%arg0: i32) -> (i32, i32) {
    %c0_i32 = arith.constant 0 : i32
    %c0_i32_0 = arith.constant 0 : i32
    %c0_i32_1 = arith.constant 0 : i32
    return %c0_i32, %c0_i32_0 : i32, i32
  }
  func.func @transform_3(%arg0: i32) -> (i32, i32) {
    %c0_i32 = arith.constant 0 : i32
    %c0_i32_0 = arith.constant 0 : i32
    %c0_i32_1 = arith.constant 0 : i32
    return %c0_i32, %c0_i32_0 : i32, i32
  }
  func.func @transform_4(%arg0: i32) -> (i32, i32) {
    %c0_i32 = arith.constant 0 : i32
    %c0_i32_0 = arith.constant 0 : i32
    %c0_i32_1 = arith.constant 0 : i32
    return %c0_i32, %c0_i32_0 : i32, i32
  }
  func.func @transform_5(%arg0: i32) -> (i32, i32) {
    %c0_i32 = arith.constant 0 : i32
    %c0_i32_0 = arith.constant 0 : i32
    %c0_i32_1 = arith.constant 0 : i32
    return %c0_i32, %c0_i32_0 : i32, i32
  }
  func.func @transform_6(%arg0: i32) -> (i32, i32) {
    %c0_i32 = arith.constant 0 : i32
    %c0_i32_0 = arith.constant 0 : i32
    %c0_i32_1 = arith.constant 0 : i32
    return %c0_i32, %c0_i32_0 : i32, i32
  }
  func.func @transform_7(%arg0: i32) -> (i32, i32) {
    %c0_i32 = arith.constant 0 : i32
    %c0_i32_0 = arith.constant 0 : i32
    return %c0_i32, %arg0 : i32, i32
  }
}

</mosaic_0001>

<bundles_post_ra>
// kernel: _qnet_forward_impl.1
= control target key start
LH: loop header
LB: loop body
LE: loop exit
PB: predicated region body
PF: predicated region fallthrough
CT: control target
= control target key end

     0   :  { %vm188_vm0 = vcmask 1043456   ;;  %vm139_vm1 = vcmask 31744   ;;  %v913_v3 = vmov 0   ;;  %vm915_vm2 = vmmov 0   ;;  %s1217_s0 = inlined_call_operand.vmem [shape: f32[4,128], index: 0, kind: input, shape index: {}]   ;;  %s1218_s1 = inlined_call_operand.vmem [shape: f32[128,4], index: 1, kind: input, shape index: {}]   ;;  %s1219_s2 = inlined_call_operand.vmem [shape: f32[128,1], index: 2, kind: input, shape index: {}]   ;;  %s1220_s4 = inlined_call_operand.vmem [shape: f32[128,1], index: 4, kind: input, shape index: {}]   ;;  %s1221_s6 = inlined_call_operand.vmem [shape: f32[2,1], index: 6, kind: input, shape index: {}]   ;;  %s1222_s3 = inlined_call_operand.vmem [shape: f32[128,128], index: 3, kind: input, shape index: {}]   ;;  %s1223_s5 = inlined_call_operand.vmem [shape: f32[2,128], index: 5, kind: input, shape index: {}]   ;;  %s1224_s7 = inlined_call_operand.vmem [shape: f32[2,128], index: 7, kind: output, shape index: {}]  }
   0x1   :  { %v26_v0 = vld [vmem:[%s1217_s0] sm:$0xf]  ;;  %v28_v2 = vld [vmem:[%s1218_s1 + $0x8] sm:$0xff]  ;;  %911 = vset.pattern.permute.xlu0 %v913_v3  ;;  %912 = vset.pattern.permute.xlu1 %v913_v3  ;;  %v29_v4 = vld [vmem:[%s1218_s1 + $0x10] sm:$0xff] }
   0x2   :  { %v27_v1 = vld [vmem:[%s1218_s1] sm:$0xff]  ;;  %791 = vmatprep.subr.msk.mxu0 %vm188_vm0, %v26_v0  ;;  %v30_v5 = vld [vmem:[%s1218_s1 + $0x18] sm:$0xff]  ;;  %v56_v8 = vld [vmem:[%s1219_s2 + $0x68] sm:$0xff] }
   0x3   :  { %793 = vmatprep.mubr.msk.f32.mxu0 %vm139_vm1, %v27_v1  ;;  %792 = vmatpush3.msk.msra.mxu0 %vm188_vm0, %v26_v0  ;;  %v31_v6 = vld [vmem:[%s1218_s1 + $0x20] sm:$0xff]  ;;  %v58_v7 = vld [vmem:[%s1219_s2 + $0x78] sm:$0xff]  ;;  %v57_v9 = vld [vmem:[%s1219_s2 + $0x70] sm:$0xff] }
   0x4   :  { %794 = vmatmul.mubr.msk.f32.vlgmr.msra.gmra.mxu0 %vm139_vm1, %v28_v2  ;;  %136 = vperm.xlu0 %911, %v58_v7   ;;  %v32_v10 = vld [vmem:[%s1218_s1 + $0x28] sm:$0xff]  ;;  %v55_v11 = vld [vmem:[%s1219_s2 + $0x60] sm:$0xff]  ;;  %v33_v12 = vld [vmem:[%s1218_s1 + $0x30] sm:$0xff] }
   0x5   :  { %796 = vmatprep.mubr.msk.f32.mxu0 %vm139_vm1, %v29_v4  ;;  %126 = vperm.xlu1 %912, %v56_v8   ;;  %v54_v13 = vld [vmem:[%s1219_s2 + $0x58] sm:$0xff]  ;;  %v53_v15 = vld [vmem:[%s1219_s2 + $0x50] sm:$0xff]  ;;  %v35_v16 = vld [vmem:[%s1218_s1 + $0x40] sm:$0xff] }
   0x6   :  { %v34_v14 = vld [vmem:[%s1218_s1 + $0x38] sm:$0xff]  ;;  %v52_v17 = vld [vmem:[%s1219_s2 + $0x48] sm:$0xff]  ;;  %v51_v19 = vld [vmem:[%s1219_s2 + $0x40] sm:$0xff] }
   0x7   :  { %v36_v18 = vld [vmem:[%s1218_s1 + $0x48] sm:$0xff]  ;;  %v37_v20 = vld [vmem:[%s1218_s1 + $0x50] sm:$0xff]  ;;  %v50_v21 = vld [vmem:[%s1219_s2 + $0x38] sm:$0xff] }
   0x8   :  { %797 = vmatmul.mubr.msk.f32.gmra.mxu0 %vm139_vm1, %v30_v5  ;;  %131 = vperm.xlu0 %911, %v57_v9   ;;  %v38_v22 = vld [vmem:[%s1218_s1 + $0x58] sm:$0xff]  ;;  %v49_v23 = vld [vmem:[%s1219_s2 + $0x30] sm:$0xff]  ;;  %v39_v24 = vld [vmem:[%s1218_s1 + $0x60] sm:$0xff] }
   0x9   :  { %799 = vmatprep.mubr.msk.f32.mxu0 %vm139_vm1, %v31_v6  ;;  %121 = vperm.xlu1 %912, %v55_v11   ;;  %v48_v25 = vld [vmem:[%s1219_s2 + $0x28] sm:$0xff]  ;;  %v47_v27 = vld [vmem:[%s1219_s2 + $0x20] sm:$0xff]  ;;  %v41_v28 = vld [vmem:[%s1218_s1 + $0x70] sm:$0xff] }
   0xa   :  { %v40_v26 = vld [vmem:[%s1218_s1 + $0x68] sm:$0xff]  ;;  %v46_v29 = vld [vmem:[%s1219_s2 + $0x18] sm:$0xff]  ;;  %v45_v31 = vld [vmem:[%s1219_s2 + $0x10] sm:$0xff] }
   0xb   :  { %v42_v30 = vld [vmem:[%s1218_s1 + $0x78] sm:$0xff]  ;;  %v44_v32 = vld [vmem:[%s1219_s2 + $0x8] sm:$0xff]  ;;  %v43_v33 = vld [vmem:[%s1219_s2] sm:$0xff] }
   0xc   :  { %800 = vmatmul.mubr.msk.f32.gmra.mxu0 %vm139_vm1, %v32_v10  ;;  %116 = vperm.xlu0 %911, %v54_v13   ;;  %v384_v34 = vld [vmem:[%s1220_s4 + $0x78] sm:$0xff]  ;;  %v383_v35 = vld [vmem:[%s1220_s4 + $0x70] sm:$0xff]  ;;  %v382_v36 = vld [vmem:[%s1220_s4 + $0x68] sm:$0xff] }
   0xd   :  { %802 = vmatprep.mubr.msk.f32.mxu0 %vm139_vm1, %v33_v12  ;;  %111 = vperm.xlu1 %912, %v53_v15   ;;  %v381_v37 = vld [vmem:[%s1220_s4 + $0x60] sm:$0xff]  ;;  %v380_v38 = vld [vmem:[%s1220_s4 + $0x58] sm:$0xff]  ;;  %v379_v39 = vld [vmem:[%s1220_s4 + $0x50] sm:$0xff] }
   0xe   :  { %v378_v40 = vld [vmem:[%s1220_s4 + $0x48] sm:$0xff]  ;;  %v377_v41 = vld [vmem:[%s1220_s4 + $0x40] sm:$0xff]  ;;  %v376_v42 = vld [vmem:[%s1220_s4 + $0x38] sm:$0xff] }
   0xf   :  { %v375_v43 = vld [vmem:[%s1220_s4 + $0x30] sm:$0xff]  ;;  %v374_v44 = vld [vmem:[%s1220_s4 + $0x28] sm:$0xff]  ;;  %v373_v45 = vld [vmem:[%s1220_s4 + $0x20] sm:$0xff] }
  0x10   :  { %803 = vmatmul.mubr.msk.f32.gmra.mxu0 %vm139_vm1, %v34_v14  ;;  %106 = vperm.xlu0 %911, %v52_v17   ;;  %v372_v46 = vld [vmem:[%s1220_s4 + $0x18] sm:$0xff]  ;;  %v371_v47 = vld [vmem:[%s1220_s4 + $0x10] sm:$0xff]  ;;  %v370_v48 = vld [vmem:[%s1220_s4 + $0x8] sm:$0xff] }
  0x11   :  { %805 = vmatprep.mubr.msk.f32.mxu0 %vm139_vm1, %v35_v16  ;;  %101 = vperm.xlu1 %912, %v51_v19   ;;  %v369_v49 = vld [vmem:[%s1220_s4] sm:$0xff] }
  0x12   :  { %v627_v50 = vld [vmem:[%s1221_s6] sm:$0x3] }
  0x13   :  { %v353_v51 = vld [vmem:[%s1222_s3] sm:$0xff] }
  0x14   :  { %806 = vmatmul.mubr.msk.f32.gmra.mxu0 %vm139_vm1, %v36_v18  ;;  %96 = vperm.xlu0 %911, %v50_v21  }
  0x15   :  { %808 = vmatprep.mubr.msk.f32.mxu0 %vm139_vm1, %v37_v20  ;;  %91 = vperm.xlu1 %912, %v49_v23  }
  0x16   :  { %849 = vmatprep.mubr.f32.mxu1 %v353_v51 }
  0x18   :  { %809 = vmatmul.mubr.msk.f32.gmra.mxu0 %vm139_vm1, %v38_v22  ;;  %86 = vperm.xlu0 %911, %v48_v25  }
  0x19   :  { %811 = vmatprep.mubr.msk.f32.mxu0 %vm139_vm1, %v39_v24  ;;  %81 = vperm.xlu1 %912, %v47_v27  }
  0x1c   :  { %812 = vmatmul.mubr.msk.f32.gmra.mxu0 %vm139_vm1, %v40_v26  ;;  %76 = vperm.xlu0 %911, %v46_v29  }
  0x1d   :  { %814 = vmatprep.mubr.msk.f32.mxu0 %vm139_vm1, %v41_v28  ;;  %71 = vperm.xlu1 %912, %v45_v31  }
  0x20   :  { %815 = vmatmul.mubr.msk.f32.gmra.mxu0 %vm139_vm1, %v42_v30  ;;  %66 = vperm.xlu0 %911, %v44_v32  }
  0x21   :  { %61 = vperm.xlu1 %912, %v43_v33  }
  0x24   :  { %462 = vperm.xlu0 %911, %v384_v34  }
  0x25   :  { %457 = vperm.xlu1 %912, %v383_v35  }
  0x28   :  { %452 = vperm.xlu0 %911, %v382_v36  }
  0x29   :  { %447 = vperm.xlu1 %912, %v381_v37  }
  0x2c   :  { %442 = vperm.xlu0 %911, %v380_v38  }
  0x2d   :  { %437 = vperm.xlu1 %912, %v379_v39  }
  0x30   :  { %432 = vperm.xlu0 %911, %v378_v40  }
  0x31   :  { %427 = vperm.xlu1 %912, %v377_v41  }
  0x34   :  { %422 = vperm.xlu0 %911, %v376_v42  }
  0x35   :  { %417 = vperm.xlu1 %912, %v375_v43  }
  0x38   :  { %412 = vperm.xlu0 %911, %v374_v44  }
  0x39   :  { %407 = vperm.xlu1 %912, %v373_v45  }
  0x3c   :  { %402 = vperm.xlu0 %911, %v372_v46  }
  0x3d   :  { %397 = vperm.xlu1 %912, %v371_v47  }
  0x40   :  { %392 = vperm.xlu0 %911, %v370_v48  }
  0x41   :  { %387 = vperm.xlu1 %912, %v369_v49  }
  0x44   :  { %630 = vperm.xlu0 %911, %v627_v50  }
  0x7f   :  { %v137_v58 = vpop.permute.xlu0 %136 }
  0x80   :  { %v127_v60 = vpop.permute.xlu1 %126 }
  0x83   :  { %v132_v63 = vpop.permute.xlu0 %131 }
  0x84   :  { %v122_v1 = vpop.permute.xlu1 %121 }
  0x87   :  { %v117_v4 = vpop.permute.xlu0 %116 }
  0x88   :  { %v112_v6 = vpop.permute.xlu1 %111 }
  0x8b   :  { %v107_v10 = vpop.permute.xlu0 %106 }
  0x8c   :  { %v102_v15 = vpop.permute.xlu1 %101 }
  0x8f   :  { %v97_v20 = vpop.permute.xlu0 %96 }
  0x90   :  { %v92_v23 = vpop.permute.xlu1 %91 }
  0x93   :  { %v87_v28 = vpop.permute.xlu0 %86 }
  0x94   :  { %v82_v31 = vpop.permute.xlu1 %81 }
  0x97   :  { %v77_v36 = vpop.permute.xlu0 %76 }
  0x98   :  { %v72_v39 = vpop.permute.xlu1 %71 }
  0x9b   :  { %v67_v44 = vpop.permute.xlu0 %66 }
  0x9c   :  { %v62_v47 = vpop.permute.xlu1 %61 }
  0xc4   :  { %v1125_v52 = vpop.f32.mrf.mxu0 }
  0xc5   :  { %v264_v45 = vadd.f32 %v1125_v52, %v67_v44  ;;  %v355_v52 = vld [vmem:[%s1222_s3 + $0x10] sm:$0xff] }
  0xc6   :  { %v1127_v53 = vpop.f32.mrf.mxu0 }
  0xc7   :  { %v259_v48 = vadd.f32 %v1127_v53, %v62_v47  ;;  %v338_v50 = vmax.f32 %v264_v45, 0.0  ;;  %v356_v53 = vld [vmem:[%s1222_s3 + $0x18] sm:$0xff] }
  0xc8   :  { %v1129_v54 = vpop.f32.mrf.mxu0 }
  0xc9   :  { %v274_v40 = vadd.f32 %v1129_v54, %v77_v36  ;;  %v337_v51 = vmax.f32 %v259_v48, 0.0  ;;  %v354_v54 = vld [vmem:[%s1222_s3 + $0x8] sm:$0xff] }
  0xca   :  { %v1131_v55 = vpop.f32.mrf.mxu0 }
  0xcb   :  { %v269_v42 = vadd.f32 %v1131_v55, %v72_v39  ;;  %v340_v46 = vmax.f32 %v274_v40, 0.0  ;;  %v357_v55 = vld [vmem:[%s1222_s3 + $0x20] sm:$0xff] }
  0xcc   :  { %v801_v56 = vpop.f32.mrf.mxu0 }
  0xcd   :  { %v284_v34 = vadd.f32 %v801_v56, %v87_v28  ;;  %v339_v49 = vmax.f32 %v269_v42, 0.0  ;;  %v358_v56 = vld [vmem:[%s1222_s3 + $0x28] sm:$0xff] }
  0xce   :  { %v278_v57 = vpop.f32.mrf.mxu0 }
  0xcf   :  { %v279_v37 = vadd.f32 %v278_v57, %v82_v31  ;;  %v342_v41 = vmax.f32 %v284_v34, 0.0  ;;  %v359_v57 = vld [vmem:[%s1222_s3 + $0x30] sm:$0xff] }
  0xd0   :  { %v804_v59 = vpop.f32.mrf.mxu0 }
  0xd1   :  { %v294_v29 = vadd.f32 %v804_v59, %v97_v20  ;;  %v341_v43 = vmax.f32 %v279_v37, 0.0  ;;  %v361_v59 = vld [vmem:[%s1222_s3 + $0x40] sm:$0xff] }
  0xd2   :  { %v288_v61 = vpop.f32.mrf.mxu0 }
  0xd3   :  { %v289_v32 = vadd.f32 %v288_v61, %v92_v23  ;;  %v344_v35 = vmax.f32 %v294_v29, 0.0  ;;  %v363_v61 = vld [vmem:[%s1222_s3 + $0x50] sm:$0xff] }
  0xd4   :  { %v807_v62 = vpop.f32.mrf.mxu0 }
  0xd5   :  { %v304_v24 = vadd.f32 %v807_v62, %v107_v10  ;;  %v343_v38 = vmax.f32 %v289_v32, 0.0  ;;  %v364_v62 = vld [vmem:[%s1222_s3 + $0x58] sm:$0xff]  ;;  %v463_v10 = vpop.permute.xlu0 %462 }
  0xd6   :  { %v298_v0 = vpop.f32.mrf.mxu0 }
  0xd7   :  { %v299_v26 = vadd.f32 %v298_v0, %v102_v15  ;;  %v346_v30 = vmax.f32 %v304_v24, 0.0  ;;  %v366_v0 = vld [vmem:[%s1222_s3 + $0x68] sm:$0xff] }
  0xd8   :  { %v810_v2 = vpop.f32.mrf.mxu0 }
  0xd9   :  { %v314_v18 = vadd.f32 %v810_v2, %v117_v4  ;;  %v345_v33 = vmax.f32 %v299_v26, 0.0  ;;  %v368_v2 = vld [vmem:[%s1222_s3 + $0x78] sm:$0xff]  ;;  %v453_v15 = vpop.permute.xlu0 %452 }
  0xda   :  { %v308_v3 = vpop.f32.mrf.mxu0 }
  0xdb   :  { %v309_v21 = vadd.f32 %v308_v3, %v112_v6  ;;  %v348_v25 = vmax.f32 %v314_v18, 0.0  ;;  %v914_v3 = vmov 0.0  }
  0xdc   :  { %v813_v5 = vpop.f32.mrf.mxu0  ;;  %873 = vmatprep.subr.mxu0 %v914_v3  ;;  %905 = vmatprep.mubr.msk.f32.mxu0 %vm915_vm2, %v914_v3 }
  0xdd   :  { %v324_v12 = vadd.f32 %v813_v5, %v127_v60  ;;  %v347_v27 = vmax.f32 %v309_v21, 0.0  ;;  %v362_v60 = vld [vmem:[%s1222_s3 + $0x48] sm:$0xff]  ;;  %v443_v20 = vpop.permute.xlu0 %442 }
  0xde   :  { %v318_v7 = vpop.f32.mrf.mxu0 }
  0xdf   :  { %v319_v16 = vadd.f32 %v318_v7, %v122_v1  ;;  %v350_v19 = vmax.f32 %v324_v12, 0.0  ;;  %v367_v1 = vld [vmem:[%s1222_s3 + $0x70] sm:$0xff]  ;;  %v458_v12 = vpop.permute.xlu1 %457 }
  0xe0   :  { %v816_v8 = vpop.f32.mrf.mxu0 }
  0xe1   :  { %v334_v9 = vadd.f32 %v816_v8, %v137_v58  ;;  %v349_v22 = vmax.f32 %v319_v16, 0.0  ;;  %v360_v58 = vld [vmem:[%s1222_s3 + $0x38] sm:$0xff]  ;;  %v433_v26 = vpop.permute.xlu0 %432 }
  0xe2   :  { %v328_v11 = vpop.f32.mrf.mxu0 }
  0xe3   :  { %v352_v13 = vmax.f32 %v334_v9, 0.0  ;;  %v329_v14 = vadd.f32 %v328_v11, %v132_v63  ;;  %v365_v63 = vld [vmem:[%s1222_s3 + $0x60] sm:$0xff] }
  0xe5   :  { %v351_v17 = vmax.f32 %v329_v14, 0.0  ;;  %817 = vmatprep.subr.mxu1 %v352_v13  ;;  %v423_v36 = vpop.permute.xlu0 %422 }
  0xe6   :  { %818 = vmatpush3.msra.mxu1 %v352_v13 }
  0xe7   :  { %819 = vmatprep.subr.mxu1 %v351_v17 }
  0xe8   :  { %820 = vmatpush3.msra.mxu1 %v351_v17  ;;  %v448_v17 = vpop.permute.xlu1 %447 }
  0xe9   :  { %821 = vmatprep.subr.mxu1 %v350_v19  ;;  %v413_v44 = vpop.permute.xlu0 %412 }
  0xea   :  { %822 = vmatpush3.msra.mxu1 %v350_v19 }
  0xeb   :  { %823 = vmatprep.subr.mxu1 %v349_v22 }
  0xec   :  { %824 = vmatpush3.msra.mxu1 %v349_v22  ;;  %v438_v22 = vpop.permute.xlu1 %437 }
  0xed   :  { %825 = vmatprep.subr.mxu1 %v348_v25 }
  0xee   :  { %826 = vmatpush3.msra.mxu1 %v348_v25 }
  0xef   :  { %827 = vmatprep.subr.mxu1 %v347_v27 }
  0xf0   :  { %828 = vmatpush3.msra.mxu1 %v347_v27  ;;  %v428_v31 = vpop.permute.xlu1 %427 }
  0xf1   :  { %829 = vmatprep.subr.mxu1 %v346_v30 }
  0xf2   :  { %830 = vmatpush3.msra.mxu1 %v346_v30 }
  0xf3   :  { %831 = vmatprep.subr.mxu1 %v345_v33 }
  0xf4   :  { %832 = vmatpush3.msra.mxu1 %v345_v33  ;;  %v418_v39 = vpop.permute.xlu1 %417 }
  0xf5   :  { %833 = vmatprep.subr.mxu1 %v344_v35 }
  0xf6   :  { %834 = vmatpush3.msra.mxu1 %v344_v35 }
  0xf7   :  { %835 = vmatprep.subr.mxu1 %v343_v38 }
  0xf8   :  { %836 = vmatpush3.msra.mxu1 %v343_v38  ;;  %v408_v47 = vpop.permute.xlu1 %407 }
  0xf9   :  { %837 = vmatprep.subr.mxu1 %v342_v41 }
  0xfa   :  { %838 = vmatpush3.msra.mxu1 %v342_v41 }
  0xfb   :  { %839 = vmatprep.subr.mxu1 %v341_v43 }
  0xfc   :  { %840 = vmatpush3.msra.mxu1 %v341_v43 }
  0xfd   :  { %841 = vmatprep.subr.mxu1 %v340_v46 }
  0xfe   :  { %842 = vmatpush3.msra.mxu1 %v340_v46 }
  0xff   :  { %843 = vmatprep.subr.mxu1 %v339_v49 }
 0x100   :  { %844 = vmatpush3.msra.mxu1 %v339_v49 }
 0x101   :  { %845 = vmatprep.subr.mxu1 %v338_v50 }
 0x102   :  { %846 = vmatpush3.msra.mxu1 %v338_v50 }
 0x103   :  { %847 = vmatprep.subr.mxu1 %v337_v51 }
 0x104   :  { %848 = vmatpush3.msra.mxu1 %v337_v51 }
 0x105   :  { %850 = vmatmul.mubr.f32.vlgmr.msra.gmra.mxu1 %v354_v54  ;;  %v403_v54 = vpop.permute.xlu0 %402 }
 0x106   :  { %852 = vmatprep.mubr.f32.mxu1 %v355_v52 }
 0x109   :  { %853 = vmatmul.mubr.f32.gmra.mxu1 %v356_v53 }
 0x10a   :  { %855 = vmatprep.mubr.f32.mxu1 %v357_v55  ;;  %v398_v55 = vpop.permute.xlu1 %397 }
 0x10d   :  { %856 = vmatmul.mubr.f32.gmra.mxu1 %v358_v56 }
 0x10e   :  { %858 = vmatprep.mubr.f32.mxu1 %v359_v57 }
 0x111   :  { %859 = vmatmul.mubr.f32.gmra.mxu1 %v360_v58 }
 0x112   :  { %861 = vmatprep.mubr.f32.mxu1 %v361_v59 }
 0x115   :  { %862 = vmatmul.mubr.f32.gmra.mxu1 %v362_v60  ;;  %v393_v60 = vpop.permute.xlu0 %392 }
 0x116   :  { %864 = vmatprep.mubr.f32.mxu1 %v363_v61 }
 0x119   :  { %865 = vmatmul.mubr.f32.gmra.mxu1 %v364_v62 }
 0x11a   :  { %867 = vmatprep.mubr.f32.mxu1 %v365_v63  ;;  %v388_v63 = vpop.permute.xlu1 %387 }
 0x11d   :  { %868 = vmatmul.mubr.f32.gmra.mxu1 %v366_v0 }
 0x11e   :  { %870 = vmatprep.mubr.f32.mxu1 %v367_v1 }
 0x121   :  { %871 = vmatmul.mubr.f32.gmra.mxu1 %v368_v2 }
 0x1c5   :  { %v1184_v4 = vpop.f32.mrf.mxu1 }
 0x1c6   :  { %v537_v61 = vadd.f32 %v1184_v4, %v393_v60  ;;  %v626_v4 = vld [vmem:[%s1223_s5] sm:$0x3] }
 0x1c7   :  { %v1186_v5 = vpop.f32.mrf.mxu1 }
 0x1c8   :  { %v532_v0 = vadd.f32 %v1186_v5, %v388_v63  ;;  %v611_v2 = vmax.f32 %v537_v61, 0.0 }
 0x1c9   :  { %v1188_v6 = vpop.f32.mrf.mxu1 }
 0x1ca   :  { %v547_v56 = vadd.f32 %v1188_v6, %v403_v54  ;;  %v610_v6 = vmax.f32 %v532_v0, 0.0 }
 0x1cb   :  { %v1190_v7 = vpop.f32.mrf.mxu1 }
 0x1cc   :  { %v542_v58 = vadd.f32 %v1190_v7, %v398_v55  ;;  %v613_v62 = vmax.f32 %v547_v56, 0.0  ;;  %v631_v7 = vpop.permute.xlu0 %630 }
 0x1cd   :  { %v857_v8 = vpop.f32.mrf.mxu1 }
 0x1ce   :  { %v557_v50 = vadd.f32 %v857_v8, %v413_v44  ;;  %v612_v1 = vmax.f32 %v542_v58, 0.0 }
 0x1cf   :  { %v551_v9 = vpop.f32.mrf.mxu1 }
 0x1d0   :  { %v552_v52 = vadd.f32 %v551_v9, %v408_v47  ;;  %v615_v57 = vmax.f32 %v557_v50, 0.0 }
 0x1d1   :  { %v860_v11 = vpop.f32.mrf.mxu1 }
 0x1d2   :  { %v567_v45 = vadd.f32 %v860_v11, %v423_v36  ;;  %v614_v59 = vmax.f32 %v552_v52, 0.0 }
 0x1d3   :  { %v561_v13 = vpop.f32.mrf.mxu1 }
 0x1d4   :  { %v562_v48 = vadd.f32 %v561_v13, %v418_v39  ;;  %v617_v51 = vmax.f32 %v567_v45, 0.0 }
 0x1d5   :  { %v863_v14 = vpop.f32.mrf.mxu1 }
 0x1d6   :  { %v577_v40 = vadd.f32 %v863_v14, %v433_v26  ;;  %v616_v53 = vmax.f32 %v562_v48, 0.0 }
 0x1d7   :  { %v571_v16 = vpop.f32.mrf.mxu1 }
 0x1d8   :  { %v572_v42 = vadd.f32 %v571_v16, %v428_v31  ;;  %v619_v46 = vmax.f32 %v577_v40, 0.0 }
 0x1d9   :  { %v866_v18 = vpop.f32.mrf.mxu1 }
 0x1da   :  { %v587_v34 = vadd.f32 %v866_v18, %v443_v20  ;;  %v618_v49 = vmax.f32 %v572_v42, 0.0 }
 0x1db   :  { %v581_v19 = vpop.f32.mrf.mxu1 }
 0x1dc   :  { %v582_v37 = vadd.f32 %v581_v19, %v438_v22  ;;  %v621_v41 = vmax.f32 %v587_v34, 0.0 }
 0x1dd   :  { %v869_v21 = vpop.f32.mrf.mxu1 }
 0x1de   :  { %v597_v28 = vadd.f32 %v869_v21, %v453_v15  ;;  %v620_v43 = vmax.f32 %v582_v37, 0.0 }
 0x1df   :  { %v591_v23 = vpop.f32.mrf.mxu1 }
 0x1e0   :  { %v592_v32 = vadd.f32 %v591_v23, %v448_v17  ;;  %v623_v35 = vmax.f32 %v597_v28, 0.0 }
 0x1e1   :  { %v872_v24 = vpop.f32.mrf.mxu1 }
 0x1e2   :  { %v607_v25 = vadd.f32 %v872_v24, %v463_v10  ;;  %v622_v38 = vmax.f32 %v592_v32, 0.0 }
 0x1e3   :  { %v601_v27 = vpop.f32.mrf.mxu1 }
 0x1e4   :  { %v625_v29 = vmax.f32 %v607_v25, 0.0  ;;  %v602_v30 = vadd.f32 %v601_v27, %v458_v12 }
 0x1e6   :  { %v624_v33 = vmax.f32 %v602_v30, 0.0  ;;  %874 = vmatpush3.msra.mxu0 %v625_v29 }
 0x1e7   :  { %875 = vmatprep.subr.mxu0 %v914_v3 }
 0x1e8   :  { %876 = vmatpush3.msra.mxu0 %v624_v33 }
 0x1e9   :  { %877 = vmatprep.subr.mxu0 %v914_v3 }
 0x1ea   :  { %878 = vmatpush3.msra.mxu0 %v623_v35 }
 0x1eb   :  { %879 = vmatprep.subr.mxu0 %v914_v3 }
 0x1ec   :  { %880 = vmatpush3.msra.mxu0 %v622_v38 }
 0x1ed   :  { %881 = vmatprep.subr.mxu0 %v914_v3 }
 0x1ee   :  { %882 = vmatpush3.msra.mxu0 %v621_v41 }
 0x1ef   :  { %883 = vmatprep.subr.mxu0 %v914_v3 }
 0x1f0   :  { %884 = vmatpush3.msra.mxu0 %v620_v43 }
 0x1f1   :  { %885 = vmatprep.subr.mxu0 %v914_v3 }
 0x1f2   :  { %886 = vmatpush3.msra.mxu0 %v619_v46 }
 0x1f3   :  { %887 = vmatprep.subr.mxu0 %v914_v3 }
 0x1f4   :  { %888 = vmatpush3.msra.mxu0 %v618_v49 }
 0x1f5   :  { %889 = vmatprep.subr.mxu0 %v914_v3 }
 0x1f6   :  { %890 = vmatpush3.msra.mxu0 %v617_v51 }
 0x1f7   :  { %891 = vmatprep.subr.mxu0 %v914_v3 }
 0x1f8   :  { %892 = vmatpush3.msra.mxu0 %v616_v53 }
 0x1f9   :  { %893 = vmatprep.subr.mxu0 %v914_v3 }
 0x1fa   :  { %894 = vmatpush3.msra.mxu0 %v615_v57 }
 0x1fb   :  { %895 = vmatprep.subr.mxu0 %v914_v3 }
 0x1fc   :  { %896 = vmatpush3.msra.mxu0 %v614_v59 }
 0x1fd   :  { %897 = vmatprep.subr.mxu0 %v914_v3 }
 0x1fe   :  { %898 = vmatpush3.msra.mxu0 %v613_v62 }
 0x1ff   :  { %899 = vmatprep.subr.mxu0 %v914_v3 }
 0x200   :  { %900 = vmatpush3.msra.mxu0 %v612_v1 }
 0x201   :  { %901 = vmatprep.subr.mxu0 %v914_v3 }
 0x202   :  { %902 = vmatpush3.msra.mxu0 %v611_v2 }
 0x203   :  { %903 = vmatprep.subr.mxu0 %v914_v3 }
 0x204   :  { %904 = vmatpush3.msra.mxu0 %v610_v6 }
 0x205   :  { %906 = vmatmul.mubr.f32.vlgmr.msra.gmra.mxu0 %v626_v4 }
 0x2c5   :  { %v699_v5 = vpop.f32.mrf.mxu0 }
 0x2c6   :  { %v700_v8 = vadd.f32 %v699_v5, %v631_v7 }
 0x2c7   :  { %v907_v9 = vpop.f32.mrf.mxu0 }
 0x2c8   :  { %703 = vst [vmem:[%s1224_s7] sm:$0x3] %v700_v8 }

</bundles_post_ra>
